<compile_context>
chip_gen: v6e
topology: v6e:2x2x1
jax: 0.10.0
libtpu: 0.0.40
codegen_flags: <defaults>
</compile_context>

<pallas_src>
import jax
import jax.numpy as jnp
from jax.experimental import pallas as pl
from jax.experimental.pallas import tpu as pltpu


def _round_up(x, m):
    return ((x + m - 1) // m) * m


def _ppo_kernel(y_ref, a_ref,
                w1_ref, b1_ref, b2_ref, b3_ref,
                w2_hbm, w3_hbm,
                out_ref,
                w2_vmem, w3_vmem, dma_sem):
    # Kick off the two big weight DMAs immediately so they overlap layer-1 compute.
    cp2 = pltpu.make_async_copy(w2_hbm, w2_vmem, dma_sem.at[0])
    cp3 = pltpu.make_async_copy(w3_hbm, w3_vmem, dma_sem.at[1])
    cp2.start()
    cp3.start()

    b, obs_dim = y_ref.shape
    k_pad = w1_ref.shape[0]
    act_dim = a_ref.shape[1]
    out_pad = out_ref.shape[1]

    # In-kernel K-pad of y to the padded obs_dim (one zero concat on a single vreg row).
    y = y_ref[...]
    if k_pad > obs_dim:
        y = jnp.concatenate(
            [y, jnp.zeros((b, k_pad - obs_dim), y.dtype)], axis=1)

    # Layer 1: (B, Kp) @ (Kp, 512) -> relu      (w1/b1 auto-DMA'd; small, ~128 KiB)
    h1 = jnp.maximum(
        jnp.dot(y.astype(jnp.bfloat16), w1_ref[...],
                preferred_element_type=jnp.float32) + b1_ref[...],
        0.0)

    # Fused layer 2 (policy cols 0..255, value cols 256..511): (B,512)@(512,512) -> relu
    cp2.wait()                       # w2 DMA hidden behind layer 1
    h2 = jnp.maximum(
        jnp.dot(h1.astype(jnp.bfloat16), w2_vmem[...],
                preferred_element_type=jnp.float32) + b2_ref[...],
        0.0)

    # Fused block-diagonal layer 3: (B,512)@(512,out_pad) -> relu
    #   cols 0..act_dim-1 = policy logits y_1 (rows   0..255 = W3a)
    #   col  out_pad-1    = value head        (rows 256..511 = W3b)
    #   remaining cols    = 0 (zero weights/bias -> relu(0) = 0)
    cp3.wait()                       # w3 DMA hidden behind layers 1-2
    h3 = jnp.maximum(
        jnp.dot(h2.astype(jnp.bfloat16), w3_vmem[...],
                preferred_element_type=jnp.float32) + b3_ref[...],
        0.0)

    # out_action = softmax(a + y_1, dim=0)  — softmax over the BATCH axis, as in PyTorch.
    # `a` is placed at lane offset 0 (cols 0..act_dim-1), so no lane rotation is needed.
    # The value / pad columns also run through the (column-wise) softmax, which is
    # numerically harmless; those lanes are never read as softmax output by the wrapper.
    a_full = a_ref[...]
    if out_pad > act_dim:
        a_full = jnp.concatenate(
            [a_full, jnp.zeros((b, out_pad - act_dim), a_full.dtype)], axis=1)
    z = a_full + h3
    m = jnp.max(z, axis=0, keepdims=True)
    e = jnp.exp(z - m)
    s = jnp.sum(e, axis=0, keepdims=True)
    sm = e / s    # exact divide: s is one vreg; columns sum to exactly 1

    # Single lane-dense (B, out_pad) f32 store: last col = value, others = softmax.
    lane = jax.lax.broadcasted_iota(jnp.int32, out_ref.shape, 1)
    out_ref[...] = jnp.where(lane == out_pad - 1, h3, sm)


@jax.jit
def ppo_forward_pallas(y, a, kparams):
    """y: (B, obs_dim) f32, a: (B, act_dim) f32, kparams: fused/padded kernel params."""
    B = y.shape[0]
    act_dim = a.shape[1]
    out_pad = kparams["w3"].shape[1]    # padded output slab width (multiple of 128)

    args = (y, a,
            kparams["w1"], kparams["b1"], kparams["b2"], kparams["b3"],
            kparams["w2"], kparams["w3"])

    out_slab = pl.pallas_call(
        _ppo_kernel,
        out_shape=jax.ShapeDtypeStruct((B, out_pad), jnp.float32),
        in_specs=[
            pl.BlockSpec(memory_space=pltpu.VMEM),   # y   (unpadded)
            pl.BlockSpec(memory_space=pltpu.VMEM),   # a   (unpadded)
            pl.BlockSpec(memory_space=pltpu.VMEM),   # w1
            pl.BlockSpec(memory_space=pltpu.VMEM),   # b1
            pl.BlockSpec(memory_space=pltpu.VMEM),   # b2
            pl.BlockSpec(memory_space=pltpu.VMEM),   # b3
            pl.BlockSpec(memory_space=pl.ANY),       # w2 -> manual DMA (overlapped)
            pl.BlockSpec(memory_space=pl.ANY),       # w3 -> manual DMA (overlapped)
        ],
        out_specs=pl.BlockSpec(memory_space=pltpu.VMEM),
        scratch_shapes=[
            pltpu.VMEM(kparams["w2"].shape, kparams["w2"].dtype),
            pltpu.VMEM(kparams["w3"].shape, kparams["w3"].dtype),
            pltpu.SemaphoreType.DMA((2,)),
        ],
    )(*args)

    value = out_slab[:, out_pad - 1:out_pad]
    out_action = out_slab[:, :act_dim]
    return dict(input_state_value=value, out_action=out_action)


def _make_params(key, obs_dim, act_dim):
    """Deterministic params in PyTorch (out, in) layout (for the reference), plus the
    fused / padded / bf16 layout consumed by the kernel. Fusion is done ONCE here."""
    def linear(key, fan_in, fan_out):
        kw, kb = jax.random.split(key)
        bound = 1.0 / jnp.sqrt(jnp.float32(fan_in))  # nn.Linear default init range
        w = jax.random.uniform(kw, (fan_out, fan_in), jnp.float32, -bound, bound)
        b = jax.random.uniform(kb, (fan_out,), jnp.float32, -bound, bound)
        return w, b

    keys = jax.random.split(key, 5)
    w1, b1 = linear(keys[0], obs_dim, 512)
    w2a, b2a = linear(keys[1], 512, 256)
    w2b, b2b = linear(keys[2], 512, 256)
    w3a, b3a = linear(keys[3], 256, act_dim)
    w3b, b3b = linear(keys[4], 256, 1)

    ref_params = dict(w1=w1, b1=b1, w2a=w2a, b2a=b2a, w2b=w2b, b2b=b2b,
                      w3a=w3a, b3a=b3a, w3b=w3b, b3b=b3b)

    k_pad = _round_up(obs_dim, 128)
    out_pad = _round_up(act_dim + 1, 128)

    # Layer 1: transpose to (in, out), zero-pad K to a multiple of 128.
    w1_k = jnp.zeros((k_pad, 512), jnp.float32).at[:obs_dim, :].set(w1.T)
    b1_k = b1.reshape(1, 512)

    # Fused layer 2: [policy | value] along the output dim.
    w2_k = jnp.concatenate([w2a.T, w2b.T], axis=1)              # (512, 512)
    b2_k = jnp.concatenate([b2a, b2b]).reshape(1, 512)

    # Fused block-diagonal layer 3, padded to a 128-wide lane-dense slab:
    #   cols 0..act_dim-1 <- policy head (rows   0..255 = W3a)
    #   col  out_pad-1    <- value head  (rows 256..511 = W3b)
    w3_k = jnp.zeros((512, out_pad), jnp.float32)
    w3_k = w3_k.at[0:256, 0:act_dim].set(w3a.T)
    w3_k = w3_k.at[256:512, out_pad - 1].set(w3b[0, :])
    b3_k = jnp.zeros((1, out_pad), jnp.float32)
    b3_k = b3_k.at[0, 0:act_dim].set(b3a)
    b3_k = b3_k.at[0, out_pad - 1].set(b3b[0])

    kernel_params = dict(
        w1=w1_k.astype(jnp.bfloat16), b1=b1_k,
        w2=w2_k.astype(jnp.bfloat16), b2=b2_k,
        w3=w3_k.astype(jnp.bfloat16), b3=b3_k,
    )
    return ref_params, kernel_params


def _reference(y, a, p):
    """Pure-JAX f32 reference mirroring the PyTorch forward (unfused weights)."""
    h1 = jax.nn.relu(y @ p["w1"].T + p["b1"])
    y1 = jax.nn.relu(jax.nn.relu(h1 @ p["w2a"].T + p["b2a"]) @ p["w3a"].T + p["b3a"])
    val = jax.nn.relu(jax.nn.relu(h1 @ p["w2b"].T + p["b2b"]) @ p["w3b"].T + p["b3b"])
    out_action = jax.nn.softmax(a + y1, axis=0)
    return val, out_action


if __name__ == "__main__":
    B, obs_dim, act_dim = 8, 64, 32

    key = jax.random.PRNGKey(0)
    kp, ky, ka = jax.random.split(key, 3)
    ref_params, kernel_params = _make_params(kp, obs_dim, act_dim)

    y = jax.random.normal(ky, (B, obs_dim), jnp.float32)
    a = jax.random.normal(ka, (B, act_dim), jnp.float32)

    out = ppo_forward_pallas(y, a, kernel_params)
    value = jax.block_until_ready(out["input_state_value"])
    action = jax.block_until_ready(out["out_action"])

    ref_value, ref_action = _reference(y, a, ref_params)
    assert value.shape == (B, 1) and action.shape == (B, act_dim)
    # bf16 weights with f32 accumulation: use ~1e-2 tolerances vs the f32 reference.
    assert jnp.allclose(value, ref_value, atol=2e-2, rtol=2e-2)
    assert jnp.allclose(action, ref_action, atol=2e-2, rtol=2e-2)

    print("KERNEL_OK")
</pallas_src>

<mosaic_0001>
module attributes {stable_mosaic.version = 11 : i64} {
  func.func @_ppo_kernel(%arg0: memref<8x64xf32, #tpu.memory_space<vmem>>, %arg1: memref<8x32xf32, #tpu.memory_space<vmem>>, %arg2: memref<128x512xbf16, #tpu.memory_space<vmem>>, %arg3: memref<1x512xf32, #tpu.memory_space<vmem>>, %arg4: memref<1x512xf32, #tpu.memory_space<vmem>>, %arg5: memref<1x128xf32, #tpu.memory_space<vmem>>, %arg6: memref<512x512xbf16, #tpu.memory_space<any>>, %arg7: memref<512x128xbf16, #tpu.memory_space<any>>, %arg8: memref<8x128xf32, #tpu.memory_space<vmem>>, %arg9: memref<512x512xbf16, #tpu.memory_space<vmem>>, %arg10: memref<512x128xbf16, #tpu.memory_space<vmem>>, %arg11: memref<2x!tpu.dma_semaphore, #tpu.memory_space<semaphore_mem>>) attributes {dimension_semantics = [], scalar_prefetch = 0 : i64, scratch_operands = 3 : i64, tpu.core_type = #tpu.core_type<tc>} {
    %c0_i32 = arith.constant 0 : i32
    %0 = tpu.memref_slice %arg11[%c0_i32] : memref<2x!tpu.dma_semaphore, #tpu.memory_space<semaphore_mem>> -> memref<1x!tpu.dma_semaphore, #tpu.memory_space<semaphore_mem>>
    %1 = tpu.memref_squeeze %0 : memref<1x!tpu.dma_semaphore, #tpu.memory_space<semaphore_mem>> -> memref<!tpu.dma_semaphore, #tpu.memory_space<semaphore_mem>>
    tpu.enqueue_dma source(%arg6 : memref<512x512xbf16, #tpu.memory_space<any>>) target(%arg9 : memref<512x512xbf16, #tpu.memory_space<vmem>>) target_semaphore(%1 : memref<!tpu.dma_semaphore, #tpu.memory_space<semaphore_mem>>)
    %c1_i32 = arith.constant 1 : i32
    %2 = tpu.memref_slice %arg11[%c1_i32] : memref<2x!tpu.dma_semaphore, #tpu.memory_space<semaphore_mem>> -> memref<1x!tpu.dma_semaphore, #tpu.memory_space<semaphore_mem>>
    %3 = tpu.memref_squeeze %2 : memref<1x!tpu.dma_semaphore, #tpu.memory_space<semaphore_mem>> -> memref<!tpu.dma_semaphore, #tpu.memory_space<semaphore_mem>>
    tpu.enqueue_dma source(%arg7 : memref<512x128xbf16, #tpu.memory_space<any>>) target(%arg10 : memref<512x128xbf16, #tpu.memory_space<vmem>>) target_semaphore(%3 : memref<!tpu.dma_semaphore, #tpu.memory_space<semaphore_mem>>)
    %c0 = arith.constant 0 : index
    %c0_0 = arith.constant 0 : index
    %4 = vector.load %arg0[%c0, %c0_0] : memref<8x64xf32, #tpu.memory_space<vmem>>, vector<8x64xf32>
    %cst = arith.constant 0.000000e+00 : f32
    %5 = vector.broadcast %cst : f32 to vector<8x64xf32>
    %6 = tpu.concatenate %4, %5 in 1 : vector<8x64xf32>, vector<8x64xf32> -> vector<8x128xf32>
    %7 = arith.truncf %6 : vector<8x128xf32> to vector<8x128xbf16>
    %c0_1 = arith.constant 0 : index
    %c0_2 = arith.constant 0 : index
    %8 = vector.load %arg2[%c0_1, %c0_2] : memref<128x512xbf16, #tpu.memory_space<vmem>>, vector<128x512xbf16>
    %cst_3 = arith.constant dense<0.000000e+00> : vector<8x512xf32>
    %9 = tpu.matmul %7, %8, %cst_3 {dimension_numbers = #tpu.dot_dimension_numbers<[1], [0], [0], [1], [0, 0, 1, 1], [], []>} : vector<8x128xbf16>, vector<128x512xbf16>, vector<8x512xf32> -> vector<8x512xf32>
    %c0_4 = arith.constant 0 : index
    %c0_5 = arith.constant 0 : index
    %10 = vector.load %arg3[%c0_4, %c0_5] : memref<1x512xf32, #tpu.memory_space<vmem>>, vector<1x512xf32>
    %11 = vector.broadcast %10 : vector<1x512xf32> to vector<8x512xf32>
    %12 = arith.addf %9, %11 : vector<8x512xf32>
    %cst_6 = arith.constant 0.000000e+00 : f32
    %13 = vector.broadcast %cst_6 : f32 to vector<8x512xf32>
    %14 = arith.maximumf %12, %13 : vector<8x512xf32>
    %c0_i32_7 = arith.constant 0 : i32
    %15 = tpu.memref_slice %arg11[%c0_i32_7] : memref<2x!tpu.dma_semaphore, #tpu.memory_space<semaphore_mem>> -> memref<1x!tpu.dma_semaphore, #tpu.memory_space<semaphore_mem>>
    %16 = tpu.memref_squeeze %15 : memref<1x!tpu.dma_semaphore, #tpu.memory_space<semaphore_mem>> -> memref<!tpu.dma_semaphore, #tpu.memory_space<semaphore_mem>>
    tpu.wait_dma2 semaphore(%16 : memref<!tpu.dma_semaphore, #tpu.memory_space<semaphore_mem>>) src(%arg6 : memref<512x512xbf16, #tpu.memory_space<any>>) dst(%arg9 : memref<512x512xbf16, #tpu.memory_space<vmem>>)
    %17 = arith.truncf %14 : vector<8x512xf32> to vector<8x512xbf16>
    %c0_8 = arith.constant 0 : index
    %c0_9 = arith.constant 0 : index
    %18 = vector.load %arg9[%c0_8, %c0_9] : memref<512x512xbf16, #tpu.memory_space<vmem>>, vector<512x512xbf16>
    %cst_10 = arith.constant dense<0.000000e+00> : vector<8x512xf32>
    %19 = tpu.matmul %17, %18, %cst_10 {dimension_numbers = #tpu.dot_dimension_numbers<[1], [0], [0], [1], [0, 0, 1, 1], [], []>} : vector<8x512xbf16>, vector<512x512xbf16>, vector<8x512xf32> -> vector<8x512xf32>
    %c0_11 = arith.constant 0 : index
    %c0_12 = arith.constant 0 : index
    %20 = vector.load %arg4[%c0_11, %c0_12] : memref<1x512xf32, #tpu.memory_space<vmem>>, vector<1x512xf32>
    %21 = vector.broadcast %20 : vector<1x512xf32> to vector<8x512xf32>
    %22 = arith.addf %19, %21 : vector<8x512xf32>
    %cst_13 = arith.constant 0.000000e+00 : f32
    %23 = vector.broadcast %cst_13 : f32 to vector<8x512xf32>
    %24 = arith.maximumf %22, %23 : vector<8x512xf32>
    %c1_i32_14 = arith.constant 1 : i32
    %25 = tpu.memref_slice %arg11[%c1_i32_14] : memref<2x!tpu.dma_semaphore, #tpu.memory_space<semaphore_mem>> -> memref<1x!tpu.dma_semaphore, #tpu.memory_space<semaphore_mem>>
    %26 = tpu.memref_squeeze %25 : memref<1x!tpu.dma_semaphore, #tpu.memory_space<semaphore_mem>> -> memref<!tpu.dma_semaphore, #tpu.memory_space<semaphore_mem>>
    tpu.wait_dma2 semaphore(%26 : memref<!tpu.dma_semaphore, #tpu.memory_space<semaphore_mem>>) src(%arg7 : memref<512x128xbf16, #tpu.memory_space<any>>) dst(%arg10 : memref<512x128xbf16, #tpu.memory_space<vmem>>)
    %27 = arith.truncf %24 : vector<8x512xf32> to vector<8x512xbf16>
    %c0_15 = arith.constant 0 : index
    %c0_16 = arith.constant 0 : index
    %28 = vector.load %arg10[%c0_15, %c0_16] : memref<512x128xbf16, #tpu.memory_space<vmem>>, vector<512x128xbf16>
    %cst_17 = arith.constant dense<0.000000e+00> : vector<8x128xf32>
    %29 = tpu.matmul %27, %28, %cst_17 {dimension_numbers = #tpu.dot_dimension_numbers<[1], [0], [0], [1], [0, 0, 1, 1], [], []>} : vector<8x512xbf16>, vector<512x128xbf16>, vector<8x128xf32> -> vector<8x128xf32>
    %c0_18 = arith.constant 0 : index
    %c0_19 = arith.constant 0 : index
    %30 = vector.load %arg5[%c0_18, %c0_19] : memref<1x128xf32, #tpu.memory_space<vmem>>, vector<1x128xf32>
    %31 = vector.broadcast %30 : vector<1x128xf32> to vector<8x128xf32>
    %32 = arith.addf %29, %31 : vector<8x128xf32>
    %cst_20 = arith.constant 0.000000e+00 : f32
    %33 = vector.broadcast %cst_20 : f32 to vector<8x128xf32>
    %34 = arith.maximumf %32, %33 : vector<8x128xf32>
    %c0_21 = arith.constant 0 : index
    %c0_22 = arith.constant 0 : index
    %35 = vector.load %arg1[%c0_21, %c0_22] : memref<8x32xf32, #tpu.memory_space<vmem>>, vector<8x32xf32>
    %cst_23 = arith.constant 0.000000e+00 : f32
    %36 = vector.broadcast %cst_23 : f32 to vector<8x96xf32>
    %37 = tpu.concatenate %35, %36 in 1 : vector<8x32xf32>, vector<8x96xf32> -> vector<8x128xf32>
    %38 = arith.addf %37, %34 : vector<8x128xf32>
    %cst_24 = arith.constant dense<0xFF800000> : vector<128xf32>
    %39 = vector.multi_reduction <maximumf>, %38, %cst_24 [0] : vector<8x128xf32> to vector<128xf32>
    %40 = vector.shape_cast %39 : vector<128xf32> to vector<1x128xf32>
    %41 = vector.broadcast %40 : vector<1x128xf32> to vector<8x128xf32>
    %42 = arith.subf %38, %41 : vector<8x128xf32>
    %43 = math.exp %42 : vector<8x128xf32>
    %cst_25 = arith.constant dense<0.000000e+00> : vector<128xf32>
    %44 = vector.multi_reduction <add>, %43, %cst_25 [0] : vector<8x128xf32> to vector<128xf32>
    %45 = vector.shape_cast %44 : vector<128xf32> to vector<1x128xf32>
    %46 = vector.broadcast %45 : vector<1x128xf32> to vector<8x128xf32>
    %47 = arith.divf %43, %46 : vector<8x128xf32>
    %48 = tpu.iota {dimensions = array<i32: 1>} : vector<8x128xi32>
    %c127_i32 = arith.constant 127 : i32
    %49 = vector.broadcast %c127_i32 : i32 to vector<8x128xi32>
    %50 = arith.cmpi eq, %48, %49 : vector<8x128xi32>
    %51 = arith.select %50, %34, %47 : vector<8x128xi1>, vector<8x128xf32>
    %c0_26 = arith.constant 0 : index
    %c0_27 = arith.constant 0 : index
    %52 = vector.load %arg8[%c0_26, %c0_27] : memref<8x128xf32, #tpu.memory_space<vmem>>, vector<8x128xf32>
    tpu.vector_store %arg8[%c0_26, %c0_27], %51 {strides = array<i32>} : memref<8x128xf32, #tpu.memory_space<vmem>>, vector<8x128xf32>,
    return
  }
}

</mosaic_0001>

<bundles_post_ra>
// kernel: ppo_forward_pallas.1
= control target key start
LH: loop header
LB: loop body
LE: loop exit
PB: predicated region body
PF: predicated region fallthrough
CT: control target
= control target key end

     0   :  { %13 = vsyncpa [#allocation6], 0  ;;  %s2570_s0 = inlined_call_operand.hbm [shape: f32[8,64], index: 0, kind: input, shape index: {}]   ;;  %s2571_s1 = inlined_call_operand.hbm [shape: f32[8,32], index: 1, kind: input, shape index: {}]   ;;  %s2572_s2 = inlined_call_operand.hbm [shape: bf16[128,512], index: 2, kind: input, shape index: {}]   ;;  %s2573_s3 = inlined_call_operand.hbm [shape: f32[1,512], index: 3, kind: input, shape index: {}]   ;;  %s2574_s4 = inlined_call_operand.vmem [shape: f32[1,512], index: 4, kind: input, shape index: {}]   ;;  %s2575_s5 = inlined_call_operand.vmem [shape: f32[1,128], index: 5, kind: input, shape index: {}]   ;;  %s2576_s6 = inlined_call_operand.hbm [shape: bf16[512,512], index: 6, kind: input, shape index: {}]   ;;  %s2577_s7 = inlined_call_operand.hbm [shape: bf16[512,128], index: 7, kind: input, shape index: {}]   ;;  %s2578_s8 = inlined_call_operand.vmem [shape: f32[8,128], index: 8, kind: output, shape index: {}]  }
   0x1   :  { %14 = vsyncpa [#allocation8], 0 }
   0x2   :  { %15 = vsyncpa [#allocation11], 0  ;;  %s2425_s27 = smov [#allocation7]   ;;  %s2426_s29 = smov [#allocation5]  }
   0x3   :  { %s32_s28 = sshll.u32 %s2425_s27, 4  ;;  %s22_s30 = sshll.u32 %s2426_s29, 4  ;;  %s33_s28 = int_to_ptr.vmem [resolvable:$true] %s32_s28  ;;  %s23_s30 = int_to_ptr.vmem [resolvable:$true] %s22_s30 }
   0x4   :  { %s2303_s9 = scalar_lea.vmem %s33_s28, 128  ;;  %p2308_p1 = scmp.lt.s32.totalorder %s33_s28, %s33_s28 }
   0x5   :  { %p2304_p0 = scmp.ne.s32.totalorder %s33_s28, %s2303_s9  ;;  %p2309_p2 = scmp.lt.s32.totalorder %s2303_s9, %s2303_s9 }
   0x7   :  { %p2310_p3 = por %p2309_p2, %p2308_p1 }
   0x9   :  { %p2311_p4 = pnand %p2310_p3, %p2304_p0 }
   0xb   :  { %2314 = shalt.err (!%p2311_p4)
}
   0xc   :  { %35 = dma.hbm_to_vmem [thread:$0]  %s2571_s1, 128, %s33_s28, [#allocation8]  }
   0xd   :  { %s2323_s12 = scalar_lea.vmem %s23_s30, 128  ;;  %p2328_p6 = scmp.lt.s32.totalorder %s23_s30, %s23_s30 }
   0xe   :  { %p2324_p5 = scmp.ne.s32.totalorder %s23_s30, %s2323_s12  ;;  %p2329_p7 = scmp.lt.s32.totalorder %s2323_s12, %s2323_s12 }
  0x10   :  { %p2330_p8 = por %p2329_p7, %p2328_p6 }
  0x12   :  { %p2331_p9 = pnand %p2330_p8, %p2324_p5 }
  0x14   :  { %2334 = shalt.err (!%p2331_p9)
}
  0x15   :  { %25 = dma.hbm_to_vmem [thread:$0]  %s2570_s0, 128, %s23_s30, [#allocation6]  }
  0x16   :  { %s2427_s15 = smov [#allocation9]  }
  0x17   :  { %s41_s16 = sshll.u32 %s2427_s15, 4  ;;  %s42_s16 = int_to_ptr.vmem [resolvable:$true] %s41_s16 }
  0x18   :  { %s2343_s17 = scalar_lea.vmem %s42_s16, 4096  ;;  %p2348_p11 = scmp.lt.s32.totalorder %s42_s16, %s42_s16 }
  0x19   :  { %p2344_p10 = scmp.ne.s32.totalorder %s42_s16, %s2343_s17  ;;  %p2349_p12 = scmp.lt.s32.totalorder %s2343_s17, %s2343_s17 }
  0x1b   :  { %p2350_p13 = por %p2349_p12, %p2348_p11 }
  0x1d   :  { %p2351_p0 = pnand %p2350_p13, %p2344_p10 }
  0x1f   :  { %2354 = shalt.err (!%p2351_p0)
}
  0x20   :  { %s2428_s1 = smov 256   ;;  %s2429_s18 = smov 16  }
  0x21   :  { %47 = dma.hbm_to_vmem [thread:$0]  %s2572_s2, 4096, %s42_s16, [#allocation8], %s2428_s1, %s2428_s1, %s2429_s18  }
  0x22   :  { %s2430_s21 = smov [#allocation10]  }
  0x23   :  { %s54_s22 = sshll.u32 %s2430_s21, 4  ;;  %s55_s22 = int_to_ptr.vmem [resolvable:$true] %s54_s22 }
  0x24   :  { %s2363_s0 = scalar_lea.vmem %s55_s22, 64  ;;  %p2368_p2 = scmp.lt.s32.totalorder %s55_s22, %s55_s22 }
  0x25   :  { %p2364_p1 = scmp.ne.s32.totalorder %s55_s22, %s2363_s0  ;;  %p2369_p3 = scmp.lt.s32.totalorder %s2363_s0, %s2363_s0 }
  0x27   :  { %p2370_p4 = por %p2369_p3, %p2368_p2 }
  0x29   :  { %p2371_p5 = pnand %p2370_p4, %p2364_p1 }
  0x2b   :  { %2374 = shalt.err (!%p2371_p5)
}
  0x2c   :  { %57 = dma.hbm_to_vmem [thread:$0]  %s2573_s3, 64, %s55_s22, [#allocation11]  }
  0x2d   :  { %2415 = dma.done.wait [#allocation6], 128  }
  0x2e   :  { %2416 = vsyncadd [#allocation6], 4294967168 }
  0x2f   :  { %2417 = dma.done.wait [#allocation8], 4224  }
  0x30   :  { %2418 = vsyncadd [#allocation8], 4294963072 }
  0x31   :  { %2419 = dma.done.wait [#allocation11], 64  }
  0x32   :  { %2420 = vsyncadd [#allocation11], 4294967232  ;;  %v2431_v0 = vmov 0   ;;  %v2019_v1 = vld [vmem:[#allocation9 + $0xe4] ss:$16 sps:$4 sm:$0xff]   ;;  %vm99_vm0 = vcmask 523264  }
  0x33   :  { %348 = vmatprep.mubr.bf16.mxu0 %v2431_v0  ;;  %389 = vmatprep.mubr.bf16.mxu1 %v2431_v0  ;;  %v2021_v2 = vld [vmem:[#allocation9 + $0xec] ss:$16 sps:$4 sm:$0xff]   ;;  %v2023_v3 = vld [vmem:[#allocation9 + $0xe0] ss:$16 sps:$4 sm:$0xff]   ;;  %v2024_v4 = vld [vmem:[#allocation9 + $0xe8] ss:$16 sps:$4 sm:$0xff]  }
  0x34   :  { %316 = vmatprep.subr.bf16.mxu0 %v2019_v1  ;;  %357 = vmatprep.subr.bf16.mxu1 %v2021_v2  ;;  %v2025_v5 = vld [vmem:[#allocation9 + $0xc4] ss:$16 sps:$4 sm:$0xff]   ;;  %v2027_v6 = vld [vmem:[#allocation9 + $0xcc] ss:$16 sps:$4 sm:$0xff]   ;;  %v2029_v7 = vld [vmem:[#allocation9 + $0xc0] ss:$16 sps:$4 sm:$0xff]  }
  0x35   :  { %317 = vmatpush1.bf16.msra.mxu0 %v2023_v3  ;;  %358 = vmatpush1.bf16.msra.mxu1 %v2024_v4  ;;  %v2030_v8 = vld [vmem:[#allocation9 + $0xc8] ss:$16 sps:$4 sm:$0xff]   ;;  %v2031_v9 = vld [vmem:[#allocation9 + $0xa4] ss:$16 sps:$4 sm:$0xff]   ;;  %v2033_v10 = vld [vmem:[#allocation9 + $0xac] ss:$16 sps:$4 sm:$0xff]  }
  0x36   :  { %318 = vmatprep.subr.bf16.mxu0 %v2025_v5  ;;  %359 = vmatprep.subr.bf16.mxu1 %v2027_v6  ;;  %v2035_v11 = vld [vmem:[#allocation9 + $0xa0] ss:$16 sps:$4 sm:$0xff]   ;;  %v2036_v12 = vld [vmem:[#allocation9 + $0xa8] ss:$16 sps:$4 sm:$0xff]   ;;  %v2037_v13 = vld [vmem:[#allocation9 + $0x84] ss:$16 sps:$4 sm:$0xff]  }
  0x37   :  { %v2039_v14 = vld [vmem:[#allocation9 + $0x8c] ss:$16 sps:$4 sm:$0xff]   ;;  %v2041_v15 = vld [vmem:[#allocation9 + $0x80] ss:$16 sps:$4 sm:$0xff]   ;;  %v2042_v16 = vld [vmem:[#allocation9 + $0x88] ss:$16 sps:$4 sm:$0xff]  }
  0x38   :  { %v2043_v17 = vld [vmem:[#allocation9 + $0x64] ss:$16 sps:$4 sm:$0xff]   ;;  %v2045_v18 = vld [vmem:[#allocation9 + $0x6c] ss:$16 sps:$4 sm:$0xff]   ;;  %v2047_v19 = vld [vmem:[#allocation9 + $0x60] ss:$16 sps:$4 sm:$0xff]  }
  0x39   :  { %319 = vmatpush1.bf16.msra.mxu0 %v2029_v7  ;;  %360 = vmatpush1.bf16.msra.mxu1 %v2030_v8  ;;  %v2048_v20 = vld [vmem:[#allocation9 + $0x68] ss:$16 sps:$4 sm:$0xff]   ;;  %v2049_v21 = vld [vmem:[#allocation9 + $0x44] ss:$16 sps:$4 sm:$0xff]   ;;  %v2051_v22 = vld [vmem:[#allocation9 + $0x4c] ss:$16 sps:$4 sm:$0xff]  }
  0x3a   :  { %320 = vmatprep.subr.bf16.mxu0 %v2031_v9  ;;  %361 = vmatprep.subr.bf16.mxu1 %v2033_v10  ;;  %v2053_v23 = vld [vmem:[#allocation9 + $0x40] ss:$16 sps:$4 sm:$0xff]   ;;  %v2054_v24 = vld [vmem:[#allocation9 + $0x48] ss:$16 sps:$4 sm:$0xff]   ;;  %v2055_v25 = vld [vmem:[#allocation9 + $0x24] ss:$16 sps:$4 sm:$0xff]  }
  0x3b   :  { %v2057_v26 = vld [vmem:[#allocation9 + $0x2c] ss:$16 sps:$4 sm:$0xff]   ;;  %v2059_v27 = vld [vmem:[#allocation9 + $0x20] ss:$16 sps:$4 sm:$0xff]   ;;  %v2060_v28 = vld [vmem:[#allocation9 + $0x28] ss:$16 sps:$4 sm:$0xff]  }
  0x3c   :  { %v2061_v29 = vld [vmem:[#allocation9 + $0x4] ss:$16 sps:$4 sm:$0xff]   ;;  %v2063_v30 = vld [vmem:[#allocation9 + $0xc] ss:$16 sps:$4 sm:$0xff]   ;;  %v2065_v31 = vld [vmem:[#allocation9] ss:$16 sps:$4 sm:$0xff]  }
  0x3d   :  { %321 = vmatpush1.bf16.msra.mxu0 %v2035_v11  ;;  %362 = vmatpush1.bf16.msra.mxu1 %v2036_v12  ;;  %v2066_v32 = vld [vmem:[#allocation9 + $0x8] ss:$16 sps:$4 sm:$0xff]   ;;  %v98_v33 = vld [vmem:[#allocation5] sm:$0xff]  ;;  %vm1797_vm1 = vmpackc.low %vm99_vm0, %vm99_vm0  ;;  %s2432_s2 = smov [#allocation2]   ;;  %s2433_s25 = smov [#allocation3]  }
  0x3e   :  { %322 = vmatprep.subr.bf16.mxu0 %v2037_v13  ;;  %363 = vmatprep.subr.bf16.mxu1 %v2039_v14  ;;  %v1798_v34 = vpack.c.bf16 %v98_v33, %v98_v33  ;;  %s82_s3 = sshll.u32 %s2432_s2, 4  ;;  %s94_s26 = sshll.u32 %s2433_s25, 4  ;;  %s83_s3 = int_to_ptr.vmem [resolvable:$true] %s82_s3  ;;  %s95_s26 = int_to_ptr.vmem [resolvable:$true] %s94_s26 }
  0x3f   :  { %s2383_s27 = scalar_lea.vmem %s83_s3, 16384  ;;  %p2388_p7 = scmp.lt.s32.totalorder %s83_s3, %s83_s3 }
  0x40   :  { %p2384_p6 = scmp.ne.s32.totalorder %s83_s3, %s2383_s27  ;;  %p2389_p8 = scmp.lt.s32.totalorder %s2383_s27, %s2383_s27 }
  0x41   :  { %323 = vmatpush1.bf16.msra.mxu0 %v2041_v15  ;;  %364 = vmatpush1.bf16.msra.mxu1 %v2042_v16 }
  0x42   :  { %324 = vmatprep.subr.bf16.mxu0 %v2043_v17  ;;  %365 = vmatprep.subr.bf16.mxu1 %v2045_v18  ;;  %p2390_p9 = por %p2389_p8, %p2388_p7 }
  0x44   :  { %p2391_p10 = pnand %p2390_p9, %p2384_p6 }
  0x45   :  { %325 = vmatpush1.bf16.msra.mxu0 %v2047_v19  ;;  %366 = vmatpush1.bf16.msra.mxu1 %v2048_v20 }
  0x46   :  { %326 = vmatprep.subr.bf16.mxu0 %v2049_v21  ;;  %367 = vmatprep.subr.bf16.mxu1 %v2051_v22 }
  0x49   :  { %327 = vmatpush1.bf16.msra.mxu0 %v2053_v23  ;;  %368 = vmatpush1.bf16.msra.mxu1 %v2054_v24 }
  0x4a   :  { %328 = vmatprep.subr.bf16.mxu0 %v2055_v25  ;;  %369 = vmatprep.subr.bf16.mxu1 %v2057_v26 }
  0x4d   :  { %329 = vmatpush1.bf16.msra.mxu0 %v2059_v27  ;;  %370 = vmatpush1.bf16.msra.mxu1 %v2060_v28 }
  0x4e   :  { %330 = vmatprep.subr.bf16.mxu0 %v2061_v29  ;;  %371 = vmatprep.subr.bf16.mxu1 %v2063_v30 }
  0x51   :  { %331 = vmatpush1.bf16.msra.mxu0 %v2065_v31  ;;  %372 = vmatpush1.bf16.msra.mxu1 %v2066_v32 }
  0x54   :  { %1799 = vmatmul.mubr.msk.bf16.vlgmr.msra.gmra.mxu0 %vm1797_vm1, %v1798_v34  ;;  %1802 = vmatmul.mubr.msk.bf16.vlgmr.msra.gmra.mxu1 %vm1797_vm1, %v1798_v34 }
  0x55   :  { %2394 = shalt.err (!%p2391_p10)  }
  0x56   :  { %85 = dma.hbm_to_vmem [thread:$0]  %s2576_s6, 16384, %s83_s3, [#allocation4] }
  0x57   :  { %s2403_s30 = scalar_lea.vmem %s95_s26, 4096  ;;  %p2408_p12 = scmp.lt.s32.totalorder %s95_s26, %s95_s26 }
  0x58   :  { %p2404_p11 = scmp.ne.s32.totalorder %s95_s26, %s2403_s30  ;;  %p2409_p13 = scmp.lt.s32.totalorder %s2403_s30, %s2403_s30 }
  0x5a   :  { %p2410_p0 = por %p2409_p13, %p2408_p12 }
  0x5c   :  { %p2411_p1 = pnand %p2410_p0, %p2404_p11 }
  0x5e   :  { %2414 = shalt.err (!%p2411_p1)  }
  0x5f   :  { %97 = dma.hbm_to_vmem [thread:$0]  %s2577_s7, 4096, %s95_s26, [#allocation4 + $0x1]  ;;  %v136_v35 = vlaneseq  ;;  %v134_v39 = vld [vmem:[#allocation10] sm:$0xf] }
  0x61   :  { %v2498_v36 = vshrl.u32 %v136_v35, 7 }
  0x63   :  { %v138_v37 = vsub.s32 0, %v2498_v36  ;;  %v146_v38 = vsub.s32 2, %v2498_v36  ;;  %v142_v40 = vsub.s32 1, %v2498_v36  ;;  %v150_v41 = vsub.s32 3, %v2498_v36 }
  0x65   :  { %v139_v42 = vrot.slane %v134_v39, %v138_v37  ;;  %v147_v43 = vrot.slane %v134_v39, %v146_v38  ;;  %v143_v44 = vrot.slane %v134_v39, %v142_v40  ;;  %v151_v45 = vrot.slane %v134_v39, %v150_v41 }
 0x114   :  { %v350_v46 = vpop.f32.mrf.mxu0  ;;  %v391_v47 = vpop.f32.mrf.mxu1 }
 0x115   :  { %v2512_v48 = vadd.f32 %v350_v46, %v139_v42  ;;  %v2514_v49 = vadd.f32 %v391_v47, %v147_v43 }
 0x116   :  { %v352_v50 = vpop.f32.mrf.mxu0  ;;  %v393_v51 = vpop.f32.mrf.mxu1 }
 0x117   :  { %v398_v52 = vmax.f32 %v2512_v48, 0.0  ;;  %v400_v53 = vmax.f32 %v2514_v49, 0.0  ;;  %v353_v54 = vadd.f32 %v352_v50, %v143_v44  ;;  %v394_v55 = vadd.f32 %v393_v51, %v151_v45 }
 0x118   :  { %v354_v56 = vpop.f32.mrf.mxu0  ;;  %v395_v57 = vpop.f32.mrf.mxu1 }
 0x119   :  { %v399_v58 = vmax.f32 %v353_v54, 0.0  ;;  %v401_v59 = vmax.f32 %v394_v55, 0.0 }
 0x11a   :  { %v355_v60 = vpop.f32.mrf.mxu0  ;;  %v396_v61 = vpop.f32.mrf.mxu1 }
 0x11b   :  { %2421 = dma.done.wait [#allocation4], 16384 }
 0x11c   :  { %2422 = vsyncadd [#allocation4], 4294950912  ;;  %v2518_v62 = vpack.c.bf16 %v399_v58, %v399_v58  ;;  %v2520_v63 = vpack.c.bf16 %v401_v59, %v401_v59  ;;  %v2067_v0 = vld [vmem:[#allocation2 + $0xe4] ss:$16 sps:$4 sm:$0xff]   ;;  %v2071_v2 = vld [vmem:[#allocation2 + $0xe0] ss:$16 sps:$4 sm:$0xff]  }
 0x11d   :  { %v2069_v1 = vld [vmem:[#allocation2 + $0x2e4] ss:$16 sps:$4 sm:$0xff]   ;;  %1200 = vmatprep.subr.bf16.mxu0 %v2067_v0  ;;  %v2072_v3 = vld [vmem:[#allocation2 + $0x2e0] ss:$16 sps:$4 sm:$0xff]   ;;  %v2169_v48 = vld [vmem:[#allocation2 + $0xc8] ss:$16 sps:$4 sm:$0xff]  }
 0x11e   :  { %1232 = vmatprep.mubr.bf16.mxu0 %v2518_v62  ;;  %1273 = vmatprep.mubr.bf16.mxu1 %v2520_v63  ;;  %v2073_v4 = vld [vmem:[#allocation2 + $0xc4] ss:$16 sps:$4 sm:$0xff]   ;;  %v2077_v6 = vld [vmem:[#allocation2 + $0xc0] ss:$16 sps:$4 sm:$0xff]   ;;  %v2177_v49 = vld [vmem:[#allocation2 + $0xac] ss:$16 sps:$4 sm:$0xff]  }
 0x11f   :  { %1241 = vmatprep.subr.bf16.mxu1 %v2069_v1  ;;  %1201 = vmatpush1.bf16.msra.mxu0 %v2071_v2  ;;  %v2075_v5 = vld [vmem:[#allocation2 + $0x2c4] ss:$16 sps:$4 sm:$0xff]   ;;  %v2078_v7 = vld [vmem:[#allocation2 + $0x2c0] ss:$16 sps:$4 sm:$0xff]  }
 0x120   :  { %1242 = vmatpush1.bf16.msra.mxu1 %v2072_v3  ;;  %1202 = vmatprep.subr.bf16.mxu0 %v2073_v4  ;;  %v2079_v8 = vld [vmem:[#allocation2 + $0xa4] ss:$16 sps:$4 sm:$0xff]   ;;  %v2083_v10 = vld [vmem:[#allocation2 + $0xa0] ss:$16 sps:$4 sm:$0xff]  }
 0x121   :  { %1243 = vmatprep.subr.bf16.mxu1 %v2075_v5  ;;  %v2081_v9 = vld [vmem:[#allocation2 + $0x2a4] ss:$16 sps:$4 sm:$0xff]   ;;  %v2084_v11 = vld [vmem:[#allocation2 + $0x2a0] ss:$16 sps:$4 sm:$0xff]  }
 0x122   :  { %v2085_v12 = vld [vmem:[#allocation2 + $0x84] ss:$16 sps:$4 sm:$0xff]   ;;  %v2089_v14 = vld [vmem:[#allocation2 + $0x80] ss:$16 sps:$4 sm:$0xff]  }
 0x123   :  { %1203 = vmatpush1.bf16.msra.mxu0 %v2077_v6  ;;  %v2087_v13 = vld [vmem:[#allocation2 + $0x284] ss:$16 sps:$4 sm:$0xff]   ;;  %v2090_v15 = vld [vmem:[#allocation2 + $0x280] ss:$16 sps:$4 sm:$0xff]  }
 0x124   :  { %1244 = vmatpush1.bf16.msra.mxu1 %v2078_v7  ;;  %1204 = vmatprep.subr.bf16.mxu0 %v2079_v8  ;;  %v2091_v16 = vld [vmem:[#allocation2 + $0x64] ss:$16 sps:$4 sm:$0xff]   ;;  %v2095_v18 = vld [vmem:[#allocation2 + $0x60] ss:$16 sps:$4 sm:$0xff]  }
 0x125   :  { %1245 = vmatprep.subr.bf16.mxu1 %v2081_v9  ;;  %v2093_v17 = vld [vmem:[#allocation2 + $0x264] ss:$16 sps:$4 sm:$0xff]   ;;  %v2096_v19 = vld [vmem:[#allocation2 + $0x260] ss:$16 sps:$4 sm:$0xff]  }
 0x126   :  { %v2097_v20 = vld [vmem:[#allocation2 + $0x44] ss:$16 sps:$4 sm:$0xff]   ;;  %v2101_v22 = vld [vmem:[#allocation2 + $0x40] ss:$16 sps:$4 sm:$0xff]  }
 0x127   :  { %1205 = vmatpush1.bf16.msra.mxu0 %v2083_v10  ;;  %v2099_v21 = vld [vmem:[#allocation2 + $0x244] ss:$16 sps:$4 sm:$0xff]   ;;  %v2102_v23 = vld [vmem:[#allocation2 + $0x240] ss:$16 sps:$4 sm:$0xff]  }
 0x128   :  { %1246 = vmatpush1.bf16.msra.mxu1 %v2084_v11  ;;  %1206 = vmatprep.subr.bf16.mxu0 %v2085_v12  ;;  %v2103_v24 = vld [vmem:[#allocation2 + $0x24] ss:$16 sps:$4 sm:$0xff]   ;;  %v2107_v26 = vld [vmem:[#allocation2 + $0x20] ss:$16 sps:$4 sm:$0xff]   ;;  %v2165_v12 = vld [vmem:[#allocation2 + $0xec] ss:$16 sps:$4 sm:$0xff]  }
 0x129   :  { %1247 = vmatprep.subr.bf16.mxu1 %v2087_v13  ;;  %v2105_v25 = vld [vmem:[#allocation2 + $0x224] ss:$16 sps:$4 sm:$0xff]   ;;  %v2108_v27 = vld [vmem:[#allocation2 + $0x220] ss:$16 sps:$4 sm:$0xff]   ;;  %v2168_v13 = vld [vmem:[#allocation2 + $0x2ec] ss:$16 sps:$4 sm:$0xff]  }
 0x12a   :  { %v2109_v28 = vld [vmem:[#allocation2 + $0x4] ss:$16 sps:$4 sm:$0xff]   ;;  %v2113_v30 = vld [vmem:[#allocation2] ss:$16 sps:$4 sm:$0xff]  }
 0x12b   :  { %1207 = vmatpush1.bf16.msra.mxu0 %v2089_v14  ;;  %v2111_v29 = vld [vmem:[#allocation2 + $0x204] ss:$16 sps:$4 sm:$0xff]   ;;  %v2114_v31 = vld [vmem:[#allocation2 + $0x200] ss:$16 sps:$4 sm:$0xff]   ;;  %v2527_v14 = vpack.c.bf16 %v398_v52, %v398_v52  ;;  %v2172_v52 = vld [vmem:[#allocation2 + $0x2c8] ss:$16 sps:$4 sm:$0xff]  }
 0x12c   :  { %1248 = vmatpush1.bf16.msra.mxu1 %v2090_v15  ;;  %1208 = vmatprep.subr.bf16.mxu0 %v2091_v16  ;;  %v2115_v32 = vld [vmem:[#allocation2 + $0x1e4] ss:$16 sps:$4 sm:$0xff]   ;;  %v2119_v34 = vld [vmem:[#allocation2 + $0x1e0] ss:$16 sps:$4 sm:$0xff]   ;;  %v2532_v15 = vpack.c.bf16 %v400_v53, %v400_v53  ;;  %v2163_v16 = vld [vmem:[#allocation2 + $0xe8] ss:$16 sps:$4 sm:$0xff]  }
 0x12d   :  { %1249 = vmatprep.subr.bf16.mxu1 %v2093_v17  ;;  %v2117_v33 = vld [vmem:[#allocation2 + $0x3e4] ss:$16 sps:$4 sm:$0xff]   ;;  %v2120_v39 = vld [vmem:[#allocation2 + $0x3e0] ss:$16 sps:$4 sm:$0xff]   ;;  %v2166_v17 = vld [vmem:[#allocation2 + $0x2e8] ss:$16 sps:$4 sm:$0xff]  }
 0x12e   :  { %v2121_v42 = vld [vmem:[#allocation2 + $0x1c4] ss:$16 sps:$4 sm:$0xff]   ;;  %v2125_v44 = vld [vmem:[#allocation2 + $0x1c0] ss:$16 sps:$4 sm:$0xff]   ;;  %v2180_v53 = vld [vmem:[#allocation2 + $0x2ac] ss:$16 sps:$4 sm:$0xff]  }
 0x12f   :  { %1209 = vmatpush1.bf16.msra.mxu0 %v2095_v18  ;;  %v2123_v43 = vld [vmem:[#allocation2 + $0x3c4] ss:$16 sps:$4 sm:$0xff]   ;;  %v2126_v45 = vld [vmem:[#allocation2 + $0x3c0] ss:$16 sps:$4 sm:$0xff]   ;;  %v2171_v18 = vld [vmem:[#allocation2 + $0xcc] ss:$16 sps:$4 sm:$0xff]  }
 0x130   :  { %1250 = vmatpush1.bf16.msra.mxu1 %v2096_v19  ;;  %1210 = vmatprep.subr.bf16.mxu0 %v2097_v20  ;;  %v2127_v46 = vld [vmem:[#allocation2 + $0x1a4] ss:$16 sps:$4 sm:$0xff]   ;;  %v2131_v50 = vld [vmem:[#allocation2 + $0x1a0] ss:$16 sps:$4 sm:$0xff]   ;;  %v2174_v19 = vld [vmem:[#allocation2 + $0x2cc] ss:$16 sps:$4 sm:$0xff]  }
 0x131   :  { %1251 = vmatprep.subr.bf16.mxu1 %v2099_v21  ;;  %v2129_v47 = vld [vmem:[#allocation2 + $0x3a4] ss:$16 sps:$4 sm:$0xff]   ;;  %v2132_v51 = vld [vmem:[#allocation2 + $0x3a0] ss:$16 sps:$4 sm:$0xff]   ;;  %v2175_v20 = vld [vmem:[#allocation2 + $0xa8] ss:$16 sps:$4 sm:$0xff]  }
 0x132   :  { %v2133_v54 = vld [vmem:[#allocation2 + $0x184] ss:$16 sps:$4 sm:$0xff]   ;;  %v2137_v56 = vld [vmem:[#allocation2 + $0x180] ss:$16 sps:$4 sm:$0xff]   ;;  %v2178_v21 = vld [vmem:[#allocation2 + $0x2a8] ss:$16 sps:$4 sm:$0xff]  }
 0x133   :  { %1211 = vmatpush1.bf16.msra.mxu0 %v2101_v22  ;;  %v2135_v55 = vld [vmem:[#allocation2 + $0x384] ss:$16 sps:$4 sm:$0xff]   ;;  %v2138_v57 = vld [vmem:[#allocation2 + $0x380] ss:$16 sps:$4 sm:$0xff]   ;;  %v2183_v22 = vld [vmem:[#allocation2 + $0x8c] ss:$16 sps:$4 sm:$0xff]  }
 0x134   :  { %1252 = vmatpush1.bf16.msra.mxu1 %v2102_v23  ;;  %1212 = vmatprep.subr.bf16.mxu0 %v2103_v24  ;;  %v2139_v58 = vld [vmem:[#allocation2 + $0x164] ss:$16 sps:$4 sm:$0xff]   ;;  %v2143_v60 = vld [vmem:[#allocation2 + $0x160] ss:$16 sps:$4 sm:$0xff]   ;;  %v2186_v23 = vld [vmem:[#allocation2 + $0x28c] ss:$16 sps:$4 sm:$0xff]  }
 0x135   :  { %1253 = vmatprep.subr.bf16.mxu1 %v2105_v25  ;;  %v2141_v59 = vld [vmem:[#allocation2 + $0x364] ss:$16 sps:$4 sm:$0xff]   ;;  %v2144_v61 = vld [vmem:[#allocation2 + $0x360] ss:$16 sps:$4 sm:$0xff]   ;;  %v2181_v24 = vld [vmem:[#allocation2 + $0x88] ss:$16 sps:$4 sm:$0xff]  }
 0x136   :  { %v2145_v0 = vld [vmem:[#allocation2 + $0x144] ss:$16 sps:$4 sm:$0xff]   ;;  %v2149_v2 = vld [vmem:[#allocation2 + $0x140] ss:$16 sps:$4 sm:$0xff]   ;;  %v2184_v25 = vld [vmem:[#allocation2 + $0x288] ss:$16 sps:$4 sm:$0xff]  }
 0x137   :  { %1213 = vmatpush1.bf16.msra.mxu0 %v2107_v26  ;;  %v2147_v1 = vld [vmem:[#allocation2 + $0x344] ss:$16 sps:$4 sm:$0xff]   ;;  %v2150_v3 = vld [vmem:[#allocation2 + $0x340] ss:$16 sps:$4 sm:$0xff]   ;;  %v2189_v26 = vld [vmem:[#allocation2 + $0x6c] ss:$16 sps:$4 sm:$0xff]  }
 0x138   :  { %1254 = vmatpush1.bf16.msra.mxu1 %v2108_v27  ;;  %1214 = vmatprep.subr.bf16.mxu0 %v2109_v28  ;;  %v2151_v4 = vld [vmem:[#allocation2 + $0x124] ss:$16 sps:$4 sm:$0xff]   ;;  %v2155_v6 = vld [vmem:[#allocation2 + $0x120] ss:$16 sps:$4 sm:$0xff]   ;;  %v2192_v27 = vld [vmem:[#allocation2 + $0x26c] ss:$16 sps:$4 sm:$0xff]  }
 0x139   :  { %1255 = vmatprep.subr.bf16.mxu1 %v2111_v29  ;;  %v2153_v5 = vld [vmem:[#allocation2 + $0x324] ss:$16 sps:$4 sm:$0xff]   ;;  %v2156_v7 = vld [vmem:[#allocation2 + $0x320] ss:$16 sps:$4 sm:$0xff]   ;;  %v2187_v28 = vld [vmem:[#allocation2 + $0x68] ss:$16 sps:$4 sm:$0xff]  }
 0x13a   :  { %v2157_v8 = vld [vmem:[#allocation2 + $0x104] ss:$16 sps:$4 sm:$0xff]   ;;  %v2161_v10 = vld [vmem:[#allocation2 + $0x100] ss:$16 sps:$4 sm:$0xff]   ;;  %v2198_v29 = vld [vmem:[#allocation2 + $0x24c] ss:$16 sps:$4 sm:$0xff]  }
 0x13b   :  { %1215 = vmatpush1.bf16.msra.mxu0 %v2113_v30  ;;  %v2159_v9 = vld [vmem:[#allocation2 + $0x304] ss:$16 sps:$4 sm:$0xff]   ;;  %v2162_v11 = vld [vmem:[#allocation2 + $0x300] ss:$16 sps:$4 sm:$0xff]   ;;  %v2193_v30 = vld [vmem:[#allocation2 + $0x48] ss:$16 sps:$4 sm:$0xff]  }
 0x13c   :  { %1256 = vmatpush1.bf16.msra.mxu1 %v2114_v31  ;;  %1216 = vmatprep.subr.bf16.mxu0 %v2115_v32  ;;  %v2196_v31 = vld [vmem:[#allocation2 + $0x248] ss:$16 sps:$4 sm:$0xff]   ;;  %v2201_v32 = vld [vmem:[#allocation2 + $0x2c] ss:$16 sps:$4 sm:$0xff]  }
 0x13d   :  { %1257 = vmatprep.subr.bf16.mxu1 %v2117_v33  ;;  %v2204_v33 = vld [vmem:[#allocation2 + $0x22c] ss:$16 sps:$4 sm:$0xff]  }
 0x13f   :  { %1217 = vmatpush2.bf16.msra.mxu0 %v2119_v34  ;;  %v2199_v34 = vld [vmem:[#allocation2 + $0x28] ss:$16 sps:$4 sm:$0xff]  }
 0x140   :  { %1258 = vmatpush2.bf16.msra.mxu1 %v2120_v39  ;;  %1218 = vmatprep.subr.bf16.mxu0 %v2121_v42  ;;  %v2202_v39 = vld [vmem:[#allocation2 + $0x228] ss:$16 sps:$4 sm:$0xff]   ;;  %v2207_v42 = vld [vmem:[#allocation2 + $0xc] ss:$16 sps:$4 sm:$0xff]  }
 0x141   :  { %1259 = vmatprep.subr.bf16.mxu1 %v2123_v43  ;;  %v2210_v43 = vld [vmem:[#allocation2 + $0x20c] ss:$16 sps:$4 sm:$0xff]  }
 0x143   :  { %1219 = vmatpush2.bf16.msra.mxu0 %v2125_v44  ;;  %v2205_v44 = vld [vmem:[#allocation2 + $0x8] ss:$16 sps:$4 sm:$0xff]  }
 0x144   :  { %1260 = vmatpush2.bf16.msra.mxu1 %v2126_v45  ;;  %1220 = vmatprep.subr.bf16.mxu0 %v2127_v46  ;;  %v2208_v45 = vld [vmem:[#allocation2 + $0x208] ss:$16 sps:$4 sm:$0xff]   ;;  %v2213_v46 = vld [vmem:[#allocation2 + $0x1ec] ss:$16 sps:$4 sm:$0xff]  }
 0x145   :  { %1261 = vmatprep.subr.bf16.mxu1 %v2129_v47  ;;  %v2216_v47 = vld [vmem:[#allocation2 + $0x3ec] ss:$16 sps:$4 sm:$0xff]  }
 0x147   :  { %1221 = vmatpush2.bf16.msra.mxu0 %v2131_v50  ;;  %v2211_v50 = vld [vmem:[#allocation2 + $0x1e8] ss:$16 sps:$4 sm:$0xff]  }
 0x148   :  { %1262 = vmatpush2.bf16.msra.mxu1 %v2132_v51  ;;  %1222 = vmatprep.subr.bf16.mxu0 %v2133_v54  ;;  %v2214_v51 = vld [vmem:[#allocation2 + $0x3e8] ss:$16 sps:$4 sm:$0xff]   ;;  %v2219_v54 = vld [vmem:[#allocation2 + $0x1cc] ss:$16 sps:$4 sm:$0xff]  }
 0x149   :  { %1263 = vmatprep.subr.bf16.mxu1 %v2135_v55  ;;  %v2222_v55 = vld [vmem:[#allocation2 + $0x3cc] ss:$16 sps:$4 sm:$0xff]  }
 0x14b   :  { %1223 = vmatpush2.bf16.msra.mxu0 %v2137_v56  ;;  %v2217_v56 = vld [vmem:[#allocation2 + $0x1c8] ss:$16 sps:$4 sm:$0xff]  }
 0x14c   :  { %1264 = vmatpush2.bf16.msra.mxu1 %v2138_v57  ;;  %1224 = vmatprep.subr.bf16.mxu0 %v2139_v58  ;;  %v2220_v57 = vld [vmem:[#allocation2 + $0x3c8] ss:$16 sps:$4 sm:$0xff]   ;;  %v2225_v58 = vld [vmem:[#allocation2 + $0x1ac] ss:$16 sps:$4 sm:$0xff]  }
 0x14d   :  { %1265 = vmatprep.subr.bf16.mxu1 %v2141_v59  ;;  %v2228_v59 = vld [vmem:[#allocation2 + $0x3ac] ss:$16 sps:$4 sm:$0xff]  }
 0x14f   :  { %1225 = vmatpush2.bf16.msra.mxu0 %v2143_v60  ;;  %v2223_v60 = vld [vmem:[#allocation2 + $0x1a8] ss:$16 sps:$4 sm:$0xff]  }
 0x150   :  { %1266 = vmatpush2.bf16.msra.mxu1 %v2144_v61  ;;  %1226 = vmatprep.subr.bf16.mxu0 %v2145_v0  ;;  %v2226_v61 = vld [vmem:[#allocation2 + $0x3a8] ss:$16 sps:$4 sm:$0xff]   ;;  %v2231_v0 = vld [vmem:[#allocation2 + $0x18c] ss:$16 sps:$4 sm:$0xff]  }
 0x151   :  { %1267 = vmatprep.subr.bf16.mxu1 %v2147_v1  ;;  %v2234_v1 = vld [vmem:[#allocation2 + $0x38c] ss:$16 sps:$4 sm:$0xff]  }
 0x153   :  { %1227 = vmatpush2.bf16.msra.mxu0 %v2149_v2  ;;  %v2229_v2 = vld [vmem:[#allocation2 + $0x188] ss:$16 sps:$4 sm:$0xff]  }
 0x154   :  { %1268 = vmatpush2.bf16.msra.mxu1 %v2150_v3  ;;  %1228 = vmatprep.subr.bf16.mxu0 %v2151_v4  ;;  %v2232_v3 = vld [vmem:[#allocation2 + $0x388] ss:$16 sps:$4 sm:$0xff]   ;;  %v2237_v4 = vld [vmem:[#allocation2 + $0x16c] ss:$16 sps:$4 sm:$0xff]  }
 0x155   :  { %1269 = vmatprep.subr.bf16.mxu1 %v2153_v5  ;;  %v2240_v5 = vld [vmem:[#allocation2 + $0x36c] ss:$16 sps:$4 sm:$0xff]  }
 0x157   :  { %1229 = vmatpush2.bf16.msra.mxu0 %v2155_v6  ;;  %v2235_v6 = vld [vmem:[#allocation2 + $0x168] ss:$16 sps:$4 sm:$0xff]  }
 0x158   :  { %1270 = vmatpush2.bf16.msra.mxu1 %v2156_v7  ;;  %1230 = vmatprep.subr.bf16.mxu0 %v2157_v8  ;;  %v2238_v7 = vld [vmem:[#allocation2 + $0x368] ss:$16 sps:$4 sm:$0xff]   ;;  %v2243_v8 = vld [vmem:[#allocation2 + $0x14c] ss:$16 sps:$4 sm:$0xff]  }
 0x159   :  { %1271 = vmatprep.subr.bf16.mxu1 %v2159_v9  ;;  %v2246_v9 = vld [vmem:[#allocation2 + $0x34c] ss:$16 sps:$4 sm:$0xff]  }
 0x15b   :  { %1231 = vmatpush2.bf16.msra.mxu0 %v2161_v10  ;;  %v2241_v10 = vld [vmem:[#allocation2 + $0x148] ss:$16 sps:$4 sm:$0xff]  }
 0x15c   :  { %1272 = vmatpush2.bf16.msra.mxu1 %v2162_v11  ;;  %1282 = vmatprep.subr.bf16.mxu0 %v2165_v12  ;;  %v2244_v11 = vld [vmem:[#allocation2 + $0x348] ss:$16 sps:$4 sm:$0xff]   ;;  %v2249_v12 = vld [vmem:[#allocation2 + $0x12c] ss:$16 sps:$4 sm:$0xff]  }
 0x15d   :  { %1323 = vmatprep.subr.bf16.mxu1 %v2168_v13  ;;  %v2252_v13 = vld [vmem:[#allocation2 + $0x32c] ss:$16 sps:$4 sm:$0xff]  }
 0x15e   :  { %1233 = vmatmul.mubr.bf16.vlgmr.msra.gmra.mxu0 %v2527_v14 }
 0x15f   :  { %1274 = vmatmul.mubr.bf16.vlgmr.msra.gmra.mxu1 %v2532_v15  ;;  %1283 = vmatpush1.bf16.msra.mxu0 %v2163_v16  ;;  %v2247_v16 = vld [vmem:[#allocation2 + $0x128] ss:$16 sps:$4 sm:$0xff]  }
 0x160   :  { %1324 = vmatpush1.bf16.msra.mxu1 %v2166_v17  ;;  %1284 = vmatprep.subr.bf16.mxu0 %v2171_v18  ;;  %v2250_v17 = vld [vmem:[#allocation2 + $0x328] ss:$16 sps:$4 sm:$0xff]   ;;  %v2255_v18 = vld [vmem:[#allocation2 + $0x10c] ss:$16 sps:$4 sm:$0xff]  }
 0x161   :  { %1325 = vmatprep.subr.bf16.mxu1 %v2174_v19  ;;  %1314 = vmatprep.mubr.bf16.mxu0 %v2518_v62  ;;  %v2190_v62 = vld [vmem:[#allocation2 + $0x268] ss:$16 sps:$4 sm:$0xff]   ;;  %v2258_v19 = vld [vmem:[#allocation2 + $0x30c] ss:$16 sps:$4 sm:$0xff]  }
 0x162   :  { %1355 = vmatprep.mubr.bf16.mxu1 %v2520_v63  ;;  %v2195_v63 = vld [vmem:[#allocation2 + $0x4c] ss:$16 sps:$4 sm:$0xff]  }
 0x163   :  { %1285 = vmatpush1.bf16.msra.mxu0 %v2169_v48  ;;  %v2253_v48 = vld [vmem:[#allocation2 + $0x108] ss:$16 sps:$4 sm:$0xff]  }
 0x164   :  { %1326 = vmatpush1.bf16.msra.mxu1 %v2172_v52  ;;  %1286 = vmatprep.subr.bf16.mxu0 %v2177_v49  ;;  %v2256_v52 = vld [vmem:[#allocation2 + $0x308] ss:$16 sps:$4 sm:$0xff]   ;;  %v538_v49 = vld [vmem:[%s2574_s4] sm:$0xf] }
 0x165   :  { %1327 = vmatprep.subr.bf16.mxu1 %v2180_v53  ;;  %v543_v53 = vrot.slane %v538_v49, %v138_v37  ;;  %v551_v37 = vrot.slane %v538_v49, %v146_v38 }
 0x167   :  { %1287 = vmatpush1.bf16.msra.mxu0 %v2175_v20  ;;  %v547_v20 = vrot.slane %v538_v49, %v142_v40  ;;  %v555_v40 = vrot.slane %v538_v49, %v150_v41 }
 0x168   :  { %1328 = vmatpush1.bf16.msra.mxu1 %v2178_v21  ;;  %1288 = vmatprep.subr.bf16.mxu0 %v2183_v22 }
 0x169   :  { %1329 = vmatprep.subr.bf16.mxu1 %v2186_v23 }
 0x16b   :  { %1289 = vmatpush1.bf16.msra.mxu0 %v2181_v24 }
 0x16c   :  { %1330 = vmatpush1.bf16.msra.mxu1 %v2184_v25  ;;  %1290 = vmatprep.subr.bf16.mxu0 %v2189_v26 }
 0x16d   :  { %1331 = vmatprep.subr.bf16.mxu1 %v2192_v27 }
 0x16f   :  { %1291 = vmatpush1.bf16.msra.mxu0 %v2187_v28 }
 0x170   :  { %1332 = vmatpush1.bf16.msra.mxu1 %v2190_v62  ;;  %1292 = vmatprep.subr.bf16.mxu0 %v2195_v63 }
 0x171   :  { %1333 = vmatprep.subr.bf16.mxu1 %v2198_v29 }
 0x173   :  { %1293 = vmatpush1.bf16.msra.mxu0 %v2193_v30 }
 0x174   :  { %1334 = vmatpush1.bf16.msra.mxu1 %v2196_v31  ;;  %1294 = vmatprep.subr.bf16.mxu0 %v2201_v32 }
 0x175   :  { %1335 = vmatprep.subr.bf16.mxu1 %v2204_v33 }
 0x177   :  { %1295 = vmatpush1.bf16.msra.mxu0 %v2199_v34 }
 0x178   :  { %1336 = vmatpush1.bf16.msra.mxu1 %v2202_v39  ;;  %1296 = vmatprep.subr.bf16.mxu0 %v2207_v42 }
 0x179   :  { %1337 = vmatprep.subr.bf16.mxu1 %v2210_v43 }
 0x17b   :  { %1297 = vmatpush1.bf16.msra.mxu0 %v2205_v44 }
 0x17c   :  { %1338 = vmatpush1.bf16.msra.mxu1 %v2208_v45  ;;  %1298 = vmatprep.subr.bf16.mxu0 %v2213_v46 }
 0x17d   :  { %1339 = vmatprep.subr.bf16.mxu1 %v2216_v47 }
 0x17f   :  { %1299 = vmatpush2.bf16.msra.mxu0 %v2211_v50 }
 0x180   :  { %1340 = vmatpush2.bf16.msra.mxu1 %v2214_v51  ;;  %1300 = vmatprep.subr.bf16.mxu0 %v2219_v54 }
 0x181   :  { %1341 = vmatprep.subr.bf16.mxu1 %v2222_v55 }
 0x183   :  { %1301 = vmatpush2.bf16.msra.mxu0 %v2217_v56 }
 0x184   :  { %1342 = vmatpush2.bf16.msra.mxu1 %v2220_v57  ;;  %1302 = vmatprep.subr.bf16.mxu0 %v2225_v58 }
 0x185   :  { %1343 = vmatprep.subr.bf16.mxu1 %v2228_v59 }
 0x187   :  { %1303 = vmatpush2.bf16.msra.mxu0 %v2223_v60 }
 0x188   :  { %1344 = vmatpush2.bf16.msra.mxu1 %v2226_v61  ;;  %1304 = vmatprep.subr.bf16.mxu0 %v2231_v0 }
 0x189   :  { %1345 = vmatprep.subr.bf16.mxu1 %v2234_v1 }
 0x18b   :  { %1305 = vmatpush2.bf16.msra.mxu0 %v2229_v2 }
 0x18c   :  { %1346 = vmatpush2.bf16.msra.mxu1 %v2232_v3  ;;  %1306 = vmatprep.subr.bf16.mxu0 %v2237_v4 }
 0x18d   :  { %1347 = vmatprep.subr.bf16.mxu1 %v2240_v5 }
 0x18f   :  { %1307 = vmatpush2.bf16.msra.mxu0 %v2235_v6 }
 0x190   :  { %1348 = vmatpush2.bf16.msra.mxu1 %v2238_v7  ;;  %1308 = vmatprep.subr.bf16.mxu0 %v2243_v8 }
 0x191   :  { %1349 = vmatprep.subr.bf16.mxu1 %v2246_v9 }
 0x193   :  { %1309 = vmatpush2.bf16.msra.mxu0 %v2241_v10 }
 0x194   :  { %1350 = vmatpush2.bf16.msra.mxu1 %v2244_v11  ;;  %1310 = vmatprep.subr.bf16.mxu0 %v2249_v12 }
 0x195   :  { %1351 = vmatprep.subr.bf16.mxu1 %v2252_v13 }
 0x197   :  { %1311 = vmatpush2.bf16.msra.mxu0 %v2247_v16 }
 0x198   :  { %1352 = vmatpush2.bf16.msra.mxu1 %v2250_v17  ;;  %1312 = vmatprep.subr.bf16.mxu0 %v2255_v18 }
 0x199   :  { %1353 = vmatprep.subr.bf16.mxu1 %v2258_v19 }
 0x19b   :  { %1313 = vmatpush2.bf16.msra.mxu0 %v2253_v48 }
 0x19c   :  { %1354 = vmatpush2.bf16.msra.mxu1 %v2256_v52 }
 0x19e   :  { %1315 = vmatmul.mubr.bf16.vlgmr.msra.gmra.mxu0 %v2527_v14 }
 0x19f   :  { %1356 = vmatmul.mubr.bf16.vlgmr.msra.gmra.mxu1 %v2532_v15 }
 0x21e   :  { %v1234_v21 = vpop.f32.mrf.mxu0 }
 0x21f   :  { %v1275_v22 = vpop.f32.mrf.mxu1  ;;  %v1235_v23 = vadd.f32 %v1234_v21, %v543_v53 }
 0x220   :  { %v1236_v24 = vpop.f32.mrf.mxu0 }
 0x221   :  { %v1277_v25 = vpop.f32.mrf.mxu1  ;;  %v2547_v26 = vadd.f32 %v1275_v22, %v1235_v23  ;;  %v1237_v14 = vadd.f32 %v1236_v24, %v547_v20 }
 0x222   :  { %v1238_v27 = vpop.f32.mrf.mxu0 }
 0x223   :  { %v1279_v15 = vpop.f32.mrf.mxu1  ;;  %v1364_v28 = vmax.f32 %v2547_v26, 0.0  ;;  %v1278_v62 = vadd.f32 %v1277_v25, %v1237_v14 }
 0x224   :  { %v1239_v63 = vpop.f32.mrf.mxu0 }
 0x225   :  { %v1280_v29 = vpop.f32.mrf.mxu1  ;;  %v1365_v30 = vmax.f32 %v1278_v62, 0.0 }
 0x25e   :  { %v1316_v31 = vpop.f32.mrf.mxu0 }
 0x25f   :  { %v1357_v32 = vpop.f32.mrf.mxu1  ;;  %v1317_v33 = vadd.f32 %v1316_v31, %v551_v37 }
 0x260   :  { %v1318_v34 = vpop.f32.mrf.mxu0 }
 0x261   :  { %v1359_v39 = vpop.f32.mrf.mxu1  ;;  %v2554_v42 = vadd.f32 %v1357_v32, %v1317_v33  ;;  %v1319_v43 = vadd.f32 %v1318_v34, %v555_v40 }
 0x262   :  { %v1320_v44 = vpop.f32.mrf.mxu0 }
 0x263   :  { %v1361_v45 = vpop.f32.mrf.mxu1  ;;  %v1366_v46 = vmax.f32 %v2554_v42, 0.0  ;;  %v1360_v47 = vadd.f32 %v1359_v39, %v1319_v43 }
 0x264   :  { %v1321_v50 = vpop.f32.mrf.mxu0 }
 0x265   :  { %v1362_v51 = vpop.f32.mrf.mxu1  ;;  %v1367_v54 = vmax.f32 %v1360_v47, 0.0 }
 0x266   :  { %2423 = dma.done.wait [#allocation4 + $0x1], 4096 }
 0x267   :  { %2424 = vsyncadd [#allocation4 + $0x1], 4294963200  ;;  %v1372_v36 = vpack.c.bf16 %v1365_v30, %v1365_v30  ;;  %v1374_v38 = vpack.c.bf16 %v1367_v54, %v1367_v54  ;;  %v2259_v41 = vld [vmem:[#allocation3 + $0x78] sm:$0xff]   ;;  %v2263_v58 = vld [vmem:[#allocation3 + $0x70] sm:$0xff]   ;;  %v1371_v22 = vpack.c.bf16 %v1364_v28, %v1364_v28  ;;  %v1373_v23 = vpack.c.bf16 %v1366_v46, %v1366_v46 }
 0x268   :  { %v2260_v55 = vld [vmem:[#allocation3 + $0xf8] sm:$0xff]   ;;  %1966 = vmatprep.subr.bf16.mxu0 %v2259_v41  ;;  %v2264_v59 = vld [vmem:[#allocation3 + $0xf0] sm:$0xff]   ;;  %v2267_v0 = vld [vmem:[#allocation3 + $0x68] sm:$0xff]   ;;  %vm1720_vm2 = vcmask 261120  }
 0x269   :  { %1670 = vmatprep.mubr.bf16.mxu0 %v1372_v36  ;;  %1710 = vmatprep.mubr.bf16.mxu1 %v1374_v38  ;;  %v2261_v56 = vld [vmem:[#allocation3 + $0x38] sm:$0xff]   ;;  %v2265_v60 = vld [vmem:[#allocation3 + $0x30] sm:$0xff]   ;;  %v2268_v1 = vld [vmem:[#allocation3 + $0xe8] sm:$0xff]  }
 0x26a   :  { %1988 = vmatprep.subr.bf16.mxu1 %v2260_v55  ;;  %v2262_v57 = vld [vmem:[#allocation3 + $0xb8] sm:$0xff]   ;;  %1967 = vmatpush3.bf16.msra.mxu0 %v2261_v56  ;;  %v2266_v61 = vld [vmem:[#allocation3 + $0xb0] sm:$0xff]   ;;  %v2269_v2 = vld [vmem:[#allocation3 + $0x28] sm:$0xff]  }
 0x26b   :  { %1989 = vmatpush3.bf16.msra.mxu1 %v2262_v57  ;;  %1968 = vmatprep.subr.bf16.mxu0 %v2263_v58  ;;  %v2270_v3 = vld [vmem:[#allocation3 + $0xa8] sm:$0xff]   ;;  %v2271_v4 = vld [vmem:[#allocation3 + $0x60] sm:$0xff]   ;;  %v2275_v8 = vld [vmem:[#allocation3 + $0x58] sm:$0xff]   ;;  %v1741_v57 = vand.u32 127, %v136_v35 }
 0x26c   :  { %1990 = vmatprep.subr.bf16.mxu1 %v2264_v59  ;;  %v2272_v5 = vld [vmem:[#allocation3 + $0xe0] sm:$0xff]   ;;  %v2276_v9 = vld [vmem:[#allocation3 + $0xd8] sm:$0xff]   ;;  %v2279_v12 = vld [vmem:[#allocation3 + $0x50] sm:$0xff]  }
 0x26d   :  { %v2273_v6 = vld [vmem:[#allocation3 + $0x20] sm:$0xff]   ;;  %v2277_v10 = vld [vmem:[#allocation3 + $0x18] sm:$0xff]   ;;  %v2280_v13 = vld [vmem:[#allocation3 + $0xd0] sm:$0xff]   ;;  %vm1742_vm3 = vcmp.eq.s32.totalorder %v1741_v57, 127 }
 0x26e   :  { %1969 = vmatpush3.bf16.msra.mxu0 %v2265_v60  ;;  %v2274_v7 = vld [vmem:[#allocation3 + $0xa0] sm:$0xff]   ;;  %v2278_v11 = vld [vmem:[#allocation3 + $0x98] sm:$0xff]   ;;  %v2281_v16 = vld [vmem:[#allocation3 + $0x10] sm:$0xff]  }
 0x26f   :  { %1991 = vmatpush3.bf16.msra.mxu1 %v2266_v61  ;;  %1970 = vmatprep.subr.bf16.mxu0 %v2267_v0  ;;  %v2282_v17 = vld [vmem:[#allocation3 + $0x90] sm:$0xff]   ;;  %v2283_v18 = vld [vmem:[#allocation3 + $0x48] sm:$0xff]   ;;  %v2287_v49 = vld [vmem:[#allocation3 + $0x40] sm:$0xff]  }
 0x270   :  { %1992 = vmatprep.subr.bf16.mxu1 %v2268_v1  ;;  %v2284_v19 = vld [vmem:[#allocation3 + $0xc8] sm:$0xff]   ;;  %v2288_v53 = vld [vmem:[#allocation3 + $0xc0] sm:$0xff]  }
 0x271   :  { %v2285_v48 = vld [vmem:[#allocation3 + $0x8] sm:$0xff]   ;;  %v2289_v20 = vld [vmem:[#allocation3] sm:$0xff]  }
 0x272   :  { %1971 = vmatpush3.bf16.msra.mxu0 %v2269_v2  ;;  %v2286_v52 = vld [vmem:[#allocation3 + $0x88] sm:$0xff]   ;;  %v2290_v21 = vld [vmem:[#allocation3 + $0x80] sm:$0xff]  }
 0x273   :  { %1993 = vmatpush3.bf16.msra.mxu1 %v2270_v3  ;;  %1972 = vmatprep.subr.bf16.mxu0 %v2271_v4  ;;  %v1931_v14 = vld [vmem:[%s2575_s5] ss:$0 sm:$0xff]  ;;  %v1719_v29 = vld [vmem:[#allocation7] sm:$0xff] }
 0x274   :  { %1994 = vmatprep.subr.bf16.mxu1 %v2272_v5  ;;  %v1721_v32 = vsel %vm1720_vm2, %v1719_v29, 0.0 }
 0x276   :  { %1973 = vmatpush3.bf16.msra.mxu0 %v2273_v6 }
 0x277   :  { %1995 = vmatpush3.bf16.msra.mxu1 %v2274_v7  ;;  %1974 = vmatprep.subr.bf16.mxu0 %v2275_v8 }
 0x278   :  { %1996 = vmatprep.subr.bf16.mxu1 %v2276_v9 }
 0x27a   :  { %1975 = vmatpush3.bf16.msra.mxu0 %v2277_v10 }
 0x27b   :  { %1997 = vmatpush3.bf16.msra.mxu1 %v2278_v11  ;;  %1976 = vmatprep.subr.bf16.mxu0 %v2279_v12 }
 0x27c   :  { %1998 = vmatprep.subr.bf16.mxu1 %v2280_v13 }
 0x27e   :  { %1977 = vmatpush3.bf16.msra.mxu0 %v2281_v16 }
 0x27f   :  { %1999 = vmatpush3.bf16.msra.mxu1 %v2282_v17  ;;  %1978 = vmatprep.subr.bf16.mxu0 %v2283_v18 }
 0x280   :  { %2000 = vmatprep.subr.bf16.mxu1 %v2284_v19 }
 0x282   :  { %1979 = vmatpush3.bf16.msra.mxu0 %v2285_v48 }
 0x283   :  { %2001 = vmatpush3.bf16.msra.mxu1 %v2286_v52  ;;  %1980 = vmatprep.subr.bf16.mxu0 %v2287_v49 }
 0x284   :  { %2002 = vmatprep.subr.bf16.mxu1 %v2288_v53 }
 0x286   :  { %1981 = vmatpush3.bf16.msra.mxu0 %v2289_v20 }
 0x287   :  { %2003 = vmatpush3.bf16.msra.mxu1 %v2290_v21 }
 0x289   :  { %1671 = vmatmul.mubr.bf16.vlgmr.msra.gmra.mxu0 %v1371_v22 }
 0x28a   :  { %1711 = vmatmul.mubr.bf16.vlgmr.msra.gmra.mxu1 %v1373_v23 }
 0x349   :  { %v1982_v24 = vpop.f32.mrf.mxu0 }
 0x34a   :  { %v2004_v25 = vpop.f32.mrf.mxu1 }
 0x34b   :  { %v1983_v27 = vpop.f32.mrf.mxu0 }
 0x34c   :  { %v1984_v15 = vadd.f32 %v1983_v27, %v1982_v24  ;;  %v2005_v62 = vpop.f32.mrf.mxu1 }
 0x34d   :  { %v1985_v26 = vpop.f32.mrf.mxu0  ;;  %v2006_v28 = vadd.f32 %v2005_v62, %v2004_v25 }
 0x34e   :  { %v1673_v63 = vadd.f32 %v1984_v15, %v1931_v14  ;;  %v2007_v30 = vpop.f32.mrf.mxu1 }
 0x34f   :  { %v1986_v37 = vpop.f32.mrf.mxu0 }
 0x350   :  { %v1713_v40 = vadd.f32 %v2006_v28, %v1673_v63  ;;  %v2008_v31 = vpop.f32.mrf.mxu1 }
 0x352   :  { %v1718_v33 = vmax.f32 %v1713_v40, 0.0 }
 0x354   :  { %v1722_v34 = vadd.f32 %v1721_v32, %v1718_v33 }
 0x356   :  { %v1723_v39 = vrot.slane %v1722_v34, 4 }
 0x358   :  { %v1724_v42 = vmax.f32 %v1722_v34, %v1723_v39 }
 0x35a   :  { %v1725_v43 = vrot.slane %v1724_v42, 2 }
 0x35c   :  { %v1726_v44 = vmax.f32 %v1724_v42, %v1725_v43 }
 0x35e   :  { %v1727_v45 = vrot.slane %v1726_v44, 1 }
 0x360   :  { %v1728_v46 = vmax.f32 %v1726_v44, %v1727_v45 }
 0x362   :  { %v1729_v47 = vsub.f32 %v1722_v34, %v1728_v46 }
 0x364   :  { %v1730_v50 = vmul.f32 1.442695, %v1729_v47 }
 0x366   :  { %2291 = vpow2.f32 %v1730_v50 }
 0x373   :  { %v2292_v51 = vpop.eup %2291 }
 0x374   :  { %v1732_v54 = vrot.slane %v2292_v51, 4 }
 0x376   :  { %v1733_v36 = vadd.f32 %v2292_v51, %v1732_v54 }
 0x378   :  { %v1734_v38 = vrot.slane %v1733_v36, 2 }
 0x37a   :  { %v1735_v41 = vadd.f32 %v1734_v38, %v1733_v36 }
 0x37c   :  { %v1736_v55 = vrot.slane %v1735_v41, 1 }
 0x37e   :  { %v1737_v56 = vadd.f32 %v1736_v55, %v1735_v41 }
 0x380   :  { %2293 = vrcp.f32 %v1737_v56 }
 0x38d   :  { %v2294_v58 = vpop.eup %2293 }
 0x38e   :  { %v1739_v59 = vmul.f32 %v2294_v58, %v2292_v51 }
 0x390   :  { %v1743_v60 = vsel %vm1742_vm3, %v1718_v33, %v1739_v59 }
 0x391   :  { %1744 = vst [vmem:[%s2578_s8] sm:$0xff] %v1743_v60 }
 0x392   :  { %1749 = vsyncpa [#allocation6], 1 }
 0x393   :  { %1750 = vsyncpa [#allocation8], 1 }
 0x394   :  { %1751 = vsyncpa [#allocation11], 1 }
 0x395   :  { %1752 = vsyncmov [#allocation4] }
 0x398   :  { %s1753_s13 = vpop.sfrf %1752 }
 0x399   :  { %p1964_p2 = scmp.ne.s32.totalorder %s1753_s13, 0 }
 0x39b   :  { %1757 = shalt.err (%p1964_p2)  }
 0x39c   :  { %1759 = vsyncmov [#allocation4 + $0x1] }
 0x39f   :  { %s1760_s14 = vpop.sfrf %1759 }
 0x3a0   :  { %p1965_p3 = scmp.ne.s32.totalorder %s1760_s14, 0 }
 0x3a2   :  { %1764 = shalt.err (%p1965_p3)  }

</bundles_post_ra>
